<compile_context>
chip_gen: v6e
topology: v6e:2x2x1
jax: 0.10.0
libtpu: 0.0.40
codegen_flags: <defaults>
</compile_context>

<pallas_src>
import jax
import jax.numpy as jnp
from jax.experimental import pallas as pl
from jax.experimental.pallas import tpu as pltpu


_VMEM_SOFT_BUDGET = 28 * 1024 * 1024   # headroom under the 32 MiB scoped limit


def _round_up(v, m):
    return ((v + m - 1) // m) * m


def _pick_tile_pad(dim, candidates):
    """Pick tile from candidates minimizing padded size (tie-break: larger tile).

    Returns (tile, padded_dim). Pads `dim` up to a multiple of the tile instead
    of shrinking the tile to a divisor.
    """
    best = None
    for t in candidates:
        padded = _round_up(dim, t)
        key = (padded, -t)
        if best is None or key < best[0]:
            best = (key, t, padded)
    return best[1], best[2]


# ---------------------------------------------------------------------------
# Kernels
# ---------------------------------------------------------------------------
def _do_bn_kernel_single_k(x_ref, w_ref, ss_ref, o_ref):
    # Whole reduction resident: one MXU pass, fused scale/shift epilogue,
    # direct lane-dense store (no scratch accumulator, no zero-fill).
    z = jnp.dot(x_ref[...], w_ref[...], preferred_element_type=jnp.float32)
    o_ref[...] = (z * ss_ref[0:1, :] + ss_ref[1:2, :]).astype(o_ref.dtype)


def _do_bn_kernel_multi_k(x_ref, w_ref, ss_ref, o_ref, acc_ref):
    k = pl.program_id(2)
    part = jnp.dot(x_ref[...], w_ref[...], preferred_element_type=jnp.float32)

    @pl.when(k == 0)
    def _():
        acc_ref[...] = part            # assign on first step: no zero-fill pass

    @pl.when(k > 0)
    def _():
        acc_ref[...] += part

    @pl.when(k == pl.num_programs(2) - 1)
    def _():
        o_ref[...] = (acc_ref[...] * ss_ref[0:1, :]
                      + ss_ref[1:2, :]).astype(o_ref.dtype)


# ---------------------------------------------------------------------------
# Wrapper
# ---------------------------------------------------------------------------
def do_bn_block(x, weight, bias, gamma, beta, running_mean, running_var,
                eps=1e-5, *, mxu_dtype=None, force_pallas=False, max_tk=2048):
    """Eval-mode DoBnBlock: BatchNorm1d(Linear(Dropout(x))); dropout is identity."""
    B, Fin = x.shape
    Fout, Fin_w = weight.shape
    assert Fin_w == Fin, "weight shape must be [Fout, Fin]"
    out_dtype = x.dtype

    # Fold BN (running stats) + linear bias into per-feature scale/shift (f32).
    scale = (gamma / jnp.sqrt(running_var + eps)).astype(jnp.float32)
    shift = ((bias - running_mean) * scale + beta).astype(jnp.float32)

    # Small problems: XLA's fused matmul+BN is already fine and avoids the
    # pad/cast passes + Pallas launch overhead of a 1-2 step grid.
    if not force_pallas and (B * Fin * Fout) < (1 << 23):
        z = jnp.dot(x, weight.T, preferred_element_type=jnp.float32)
        return (z * scale[None, :] + shift[None, :]).astype(out_dtype)

    mxu_dtype = jnp.dtype(mxu_dtype) if mxu_dtype is not None else jnp.dtype(x.dtype)
    itemsize = mxu_dtype.itemsize
    sublane = {4: 8, 2: 16, 1: 32}.get(itemsize, 8)   # packed dtypes need more rows

    # --- batch (M) tiling -----------------------------------------------------
    B_al = _round_up(B, sublane)
    if B_al <= 512:
        tm, B_pad = B_al, B_al            # whole batch resident -> W streams once
    else:
        tm, B_pad = _pick_tile_pad(B_al, (512, 384, 256))
    i_blocks = B_pad // tm

    # --- output-feature (N) tiling ---------------------------------------------
    # 256-multiples feed the 2x256x256 MXU (v6e/v7x) fully; cap tn at 256 when
    # the batch axis has only 1 block so the j-axis keeps >=2 parallel blocks
    # for v7x's two TensorCores.
    Fout_al = _round_up(Fout, 128)
    tn_cap = 512 if i_blocks >= 2 else 256
    if Fout_al <= tn_cap:
        tn, Fout_pad = Fout_al, Fout_al
    else:
        cand_n = (512, 256) if tn_cap == 512 else (256,)
        tn, Fout_pad = _pick_tile_pad(Fout_al, cand_n)
    j_blocks = Fout_pad // tn

    # --- reduction (K) tiling ---------------------------------------------------
    Fin_al = _round_up(Fin, 128)
    if Fin_al <= max_tk:
        tk, Fin_pad = Fin_al, Fin_al      # single k-step (the common VGG case)
    else:
        cand_k = tuple(c for c in (2048, 1536, 1024, 768, 512, 384, 256)
                       if c <= max_tk) or (256,)
        tk, Fin_pad = _pick_tile_pad(Fin_al, cand_k)

    # --- VMEM budget check (double-buffered x/W/out + f32 acc) -----------------
    def _vmem_bytes(tm_, tn_, tk_):
        return (2 * (tm_ * tk_ + tk_ * tn_) * itemsize          # x, W (double buf)
                + 2 * tm_ * tn_ * jnp.dtype(out_dtype).itemsize  # out (double buf)
                + tm_ * tn_ * 4                                  # acc scratch
                + 2 * 2 * tn_ * 4)                               # scale/shift

    while _vmem_bytes(tm, tn, tk) > _VMEM_SOFT_BUDGET and tk > 256:
        tk = max(256, (tk // 2) // 128 * 128)
        Fin_pad = _round_up(Fin_al, tk)
    k_blocks = Fin_pad // tk

    # --- pad / cast / layout ----------------------------------------------------
    # W is transposed to [Fin, Fout] (standard MXU RHS) so no per-tile XLU
    # transpose competes with vmatmul pushes; under jit this transpose+pad+cast
    # is a single pass over the (small) weight.
    x_p = jnp.pad(x, ((0, B_pad - B), (0, Fin_pad - Fin))).astype(mxu_dtype)
    w_p = jnp.pad(weight.T, ((0, Fin_pad - Fin), (0, Fout_pad - Fout))).astype(mxu_dtype)
    ss_p = jnp.pad(jnp.stack([scale, shift], axis=0),
                   ((0, 0), (0, Fout_pad - Fout)))

    cost = pl.CostEstimate(
        flops=2 * B * Fin * Fout,
        transcendentals=0,
        bytes_accessed=(x_p.size * itemsize + w_p.size * itemsize
                        + ss_p.size * 4
                        + B_pad * Fout_pad * jnp.dtype(out_dtype).itemsize),
    )

    if k_blocks == 1:
        grid = (i_blocks, j_blocks)
        in_specs = [
            pl.BlockSpec((tm, tk), lambda i, j: (i, 0)),   # x tile [tm, Fin]
            pl.BlockSpec((tk, tn), lambda i, j: (0, j)),   # W^T tile [Fin, tn]
            pl.BlockSpec((2, tn), lambda i, j: (0, j)),    # packed scale/shift
        ]
        out_spec = pl.BlockSpec((tm, tn), lambda i, j: (i, j))
        kernel = _do_bn_kernel_single_k
        scratch = []
        dims = ("parallel", "parallel")
    else:
        grid = (i_blocks, j_blocks, k_blocks)
        in_specs = [
            pl.BlockSpec((tm, tk), lambda i, j, k: (i, k)),
            pl.BlockSpec((tk, tn), lambda i, j, k: (k, j)),
            pl.BlockSpec((2, tn), lambda i, j, k: (0, j)),
        ]
        out_spec = pl.BlockSpec((tm, tn), lambda i, j, k: (i, j))
        kernel = _do_bn_kernel_multi_k
        scratch = [pltpu.VMEM((tm, tn), jnp.float32)]
        dims = ("parallel", "parallel", "arbitrary")

    out = pl.pallas_call(
        kernel,
        out_shape=jax.ShapeDtypeStruct((B_pad, Fout_pad), out_dtype),
        grid_spec=pltpu.PrefetchScalarGridSpec(
            num_scalar_prefetch=0,
            grid=grid,
            in_specs=in_specs,
            out_specs=out_spec,
            scratch_shapes=scratch,
        ),
        compiler_params=pltpu.CompilerParams(
            dimension_semantics=dims,
            vmem_limit_bytes=32 * 1024 * 1024,
        ),
        cost_estimate=cost,
    )(x_p, w_p, ss_p)

    if B_pad != B or Fout_pad != Fout:
        out = out[:B, :Fout]
    return out


def _reference(x, weight, bias, gamma, beta, running_mean, running_var, eps=1e-5):
    z = jnp.dot(x, weight.T, precision=jax.lax.Precision.HIGHEST) + bias
    return gamma * (z - running_mean) / jnp.sqrt(running_var + eps) + beta


if __name__ == "__main__":
    def make_inputs(key, B, Fin, Fout):
        kx, kw, kb, kg, kbt, km, kv = jax.random.split(key, 7)
        x = jax.random.normal(kx, (B, Fin), dtype=jnp.float32)
        weight = jax.random.normal(kw, (Fout, Fin), dtype=jnp.float32) * 0.1
        bias = jax.random.normal(kb, (Fout,), dtype=jnp.float32) * 0.1
        gamma = jax.random.normal(kg, (Fout,), dtype=jnp.float32) * 0.1 + 1.0
        beta = jax.random.normal(kbt, (Fout,), dtype=jnp.float32) * 0.1
        rm = jax.random.normal(km, (Fout,), dtype=jnp.float32) * 0.1
        rv = jax.random.uniform(kv, (Fout,), dtype=jnp.float32) * 0.5 + 0.5
        return (x, weight, bias, gamma, beta, rm, rv)

    key = jax.random.PRNGKey(0)
    k1, k2 = jax.random.split(key)

    # 1) Tiny classifier-sized shape: exercises Fout<128 lane padding, (1,1) grid,
    #    single-k fast path.
    args_small = make_inputs(k1, 8, 32, 64)
    out_s = jax.block_until_ready(do_bn_block(*args_small, force_pallas=True))
    ref_s = _reference(*args_small)
    assert out_s.shape == (8, 64)
    assert jnp.allclose(out_s, ref_s, atol=1e-3, rtol=1e-3), "small f32 mismatch"

    # XLA fallback path for tiny problems (same semantics).
    out_f = jax.block_until_ready(do_bn_block(*args_small))
    assert jnp.allclose(out_f, ref_s, atol=1e-3, rtol=1e-3), "fallback mismatch"

    # 2) Medium VGG-like shape: Fout padded to a 256-multiple, 2 parallel j-blocks,
    #    whole batch resident, single-k fast path.
    args_med = make_inputs(k2, 128, 512, 384)
    out_m = jax.block_until_ready(do_bn_block(*args_med))
    ref_m = _reference(*args_med)
    assert out_m.shape == (128, 384)
    assert jnp.allclose(out_m, ref_m, atol=2e-3, rtol=2e-3), "medium f32 mismatch"

    # 3) Multi-k accumulator path (forced via max_tk): exercises the scratch
    #    accumulator with assign-on-first-step.
    out_k = jax.block_until_ready(do_bn_block(*args_med, max_tk=256))
    assert jnp.allclose(out_k, ref_m, atol=2e-3, rtol=2e-3), "multi-k mismatch"

    # 4) bf16 MXU operands / f32 accumulation (low-HBM-BW fast path), looser tol.
    out_b = jax.block_until_ready(do_bn_block(*args_med, mxu_dtype=jnp.bfloat16))
    assert out_b.dtype == ref_m.dtype
    assert jnp.allclose(out_b, ref_m, atol=1e-1, rtol=1e-1), "bf16 mismatch"

    print("KERNEL_OK")
</pallas_src>

<mosaic_0001>
module attributes {stable_mosaic.version = 11 : i64} {
  func.func @_do_bn_kernel_single_k(%arg0: i32, %arg1: i32, %arg2: memref<8x128xf32, #tpu.memory_space<vmem>>, %arg3: memref<128x128xf32, #tpu.memory_space<vmem>>, %arg4: memref<2x128xf32, #tpu.memory_space<vmem>>, %arg5: memref<8x128xf32, #tpu.memory_space<vmem>>) attributes {dimension_semantics = [#tpu.dimension_semantics<parallel>, #tpu.dimension_semantics<parallel>], iteration_bounds = array<i64: 1, 1>, scalar_prefetch = 0 : i64, scratch_operands = 0 : i64, tpu.core_type = #tpu.core_type<tc>, window_params = [{transform_indices = @transform_0, window_bounds = array<i64: 8, 128>}, {transform_indices = @transform_1, window_bounds = array<i64: 128, 128>}, {transform_indices = @transform_2, window_bounds = array<i64: 2, 128>}, {transform_indices = @transform_3, window_bounds = array<i64: 8, 128>}]} {
    %c0 = arith.constant 0 : index
    %c0_0 = arith.constant 0 : index
    %0 = vector.load %arg2[%c0, %c0_0] : memref<8x128xf32, #tpu.memory_space<vmem>>, vector<8x128xf32>
    %c0_1 = arith.constant 0 : index
    %c0_2 = arith.constant 0 : index
    %1 = vector.load %arg3[%c0_1, %c0_2] : memref<128x128xf32, #tpu.memory_space<vmem>>, vector<128x128xf32>
    %cst = arith.constant dense<0.000000e+00> : vector<8x128xf32>
    %2 = tpu.matmul %0, %1, %cst {dimension_numbers = #tpu.dot_dimension_numbers<[1], [0], [0], [1], [0, 0, 1, 1], [], []>} : vector<8x128xf32>, vector<128x128xf32>, vector<8x128xf32> -> vector<8x128xf32>
    %c0_3 = arith.constant 0 : index
    %c0_4 = arith.constant 0 : index
    %3 = vector.load %arg4[%c0_3, %c0_4] : memref<2x128xf32, #tpu.memory_space<vmem>>, vector<1x128xf32>
    %4 = vector.broadcast %3 : vector<1x128xf32> to vector<8x128xf32>
    %5 = arith.mulf %2, %4 : vector<8x128xf32>
    %c1 = arith.constant 1 : index
    %c0_5 = arith.constant 0 : index
    %6 = vector.load %arg4[%c1, %c0_5] : memref<2x128xf32, #tpu.memory_space<vmem>>, vector<1x128xf32>
    %7 = vector.broadcast %6 : vector<1x128xf32> to vector<8x128xf32>
    %8 = arith.addf %5, %7 : vector<8x128xf32>
    %c0_6 = arith.constant 0 : index
    %c0_7 = arith.constant 0 : index
    %9 = vector.load %arg5[%c0_6, %c0_7] : memref<8x128xf32, #tpu.memory_space<vmem>>, vector<8x128xf32>
    tpu.vector_store %arg5[%c0_6, %c0_7], %8 {strides = array<i32>} : memref<8x128xf32, #tpu.memory_space<vmem>>, vector<8x128xf32>,
    return
  }
  func.func @transform_0(%arg0: i32, %arg1: i32) -> (i32, i32) {
    %c0_i32 = arith.constant 0 : i32
    %c0_i32_0 = arith.constant 0 : i32
    return %arg0, %c0_i32 : i32, i32
  }
  func.func @transform_1(%arg0: i32, %arg1: i32) -> (i32, i32) {
    %c0_i32 = arith.constant 0 : i32
    %c0_i32_0 = arith.constant 0 : i32
    return %c0_i32, %arg1 : i32, i32
  }
  func.func @transform_2(%arg0: i32, %arg1: i32) -> (i32, i32) {
    %c0_i32 = arith.constant 0 : i32
    %c0_i32_0 = arith.constant 0 : i32
    return %c0_i32, %arg1 : i32, i32
  }
  func.func @transform_3(%arg0: i32, %arg1: i32) -> (i32, i32) {
    %c0_i32 = arith.constant 0 : i32
    return %arg0, %arg1 : i32, i32
  }
}

</mosaic_0001>

<bundles_post_ra>
// kernel: tpu_custom_call.1
= control target key start
LH: loop header
LB: loop body
LE: loop exit
PB: predicated region body
PF: predicated region fallthrough
CT: control target
= control target key end

     0   :  { %8 = vsyncpa [#allocation3], 0  ;;  %s326_s0 = inlined_call_operand.hbm [shape: f32[8,128], index: 0, kind: input, shape index: {}]   ;;  %s327_s1 = inlined_call_operand.hbm [shape: f32[128,128], index: 1, kind: input, shape index: {}]   ;;  %s328_s2 = inlined_call_operand.vmem [shape: f32[2,128], index: 2, kind: input, shape index: {}]   ;;  %s329_s3 = inlined_call_operand.hbm [shape: f32[8,128], index: 3, kind: output, shape index: {}]  }
   0x1   :  { %9 = vsyncpa [#allocation6], 0 }
   0x2   :  { %10 = vsyncpa [#allocation4], 0  ;;  %s284_s12 = smov [#allocation2]   ;;  %s285_s14 = smov [#allocation5]  }
   0x3   :  { %s17_s13 = sshll.u32 %s284_s12, 4  ;;  %s26_s15 = sshll.u32 %s285_s14, 4  ;;  %s18_s13 = int_to_ptr.vmem [resolvable:$true] %s17_s13  ;;  %s27_s15 = int_to_ptr.vmem [resolvable:$true] %s26_s15 }
   0x4   :  { %s226_s16 = scalar_lea.vmem %s18_s13, 128  ;;  %p231_p1 = scmp.lt.s32.totalorder %s18_s13, %s18_s13 }
   0x5   :  { %p227_p0 = scmp.ne.s32.totalorder %s18_s13, %s226_s16  ;;  %p232_p2 = scmp.lt.s32.totalorder %s226_s16, %s226_s16 }
   0x7   :  { %p233_p3 = por %p232_p2, %p231_p1 }
   0x9   :  { %p234_p4 = pnand %p233_p3, %p227_p0 }
   0xb   :  { %237 = shalt.err (!%p234_p4)
}
   0xc   :  { %20 = dma.hbm_to_vmem [thread:$0]  %s326_s0, 128, %s18_s13, [#allocation3]  }
   0xd   :  { %s246_s19 = scalar_lea.vmem %s27_s15, 2048  ;;  %p251_p6 = scmp.lt.s32.totalorder %s27_s15, %s27_s15 }
   0xe   :  { %p247_p5 = scmp.ne.s32.totalorder %s27_s15, %s246_s19  ;;  %p252_p7 = scmp.lt.s32.totalorder %s246_s19, %s246_s19 }
  0x10   :  { %p253_p8 = por %p252_p7, %p251_p6 }
  0x12   :  { %p254_p9 = pnand %p253_p8, %p247_p5 }
  0x14   :  { %257 = shalt.err (!%p254_p9)
}
  0x15   :  { %s286_s20 = smov 128   ;;  %s287_s21 = smov 8  }
  0x16   :  { %32 = dma.hbm_to_vmem [thread:$0]  %s327_s1, 2048, %s27_s15, [#allocation6], %s286_s20, %s286_s20, %s287_s21  }
  0x17   :  { %278 = dma.done.wait [#allocation3], 128  }
  0x18   :  { %279 = vsyncadd [#allocation3], 4294967168 }
  0x19   :  { %280 = dma.done.wait [#allocation6], 2048  }
  0x1a   :  { %281 = vsyncadd [#allocation6], 4294965248  ;;  %v288_v0 = vmov 0.0   ;;  %vm289_vm0 = vmmov 0   ;;  %v57_v1 = vld [vmem:[#allocation5 + $0x78] sm:$0xff]  ;;  %v56_v2 = vld [vmem:[#allocation5 + $0x70] sm:$0xff] }
  0x1b   :  { %176 = vmatprep.subr.mxu0 %v288_v0  ;;  %208 = vmatprep.mubr.msk.f32.mxu0 %vm289_vm0, %v288_v0  ;;  %v55_v3 = vld [vmem:[#allocation5 + $0x68] sm:$0xff]  ;;  %v54_v4 = vld [vmem:[#allocation5 + $0x60] sm:$0xff]  ;;  %v53_v5 = vld [vmem:[#allocation5 + $0x58] sm:$0xff]  ;;  %s290_s26 = smov [#allocation7]  }
  0x1c   :  { %177 = vmatpush3.msra.mxu0 %v57_v1  ;;  %v52_v6 = vld [vmem:[#allocation5 + $0x50] sm:$0xff]  ;;  %v51_v7 = vld [vmem:[#allocation5 + $0x48] sm:$0xff]  ;;  %v50_v8 = vld [vmem:[#allocation5 + $0x40] sm:$0xff]  ;;  %s147_s27 = sshll.u32 %s290_s26, 4  ;;  %s148_s27 = int_to_ptr.vmem [resolvable:$true] %s147_s27 }
  0x1d   :  { %178 = vmatprep.subr.mxu0 %v288_v0  ;;  %v49_v9 = vld [vmem:[#allocation5 + $0x38] sm:$0xff]  ;;  %v48_v10 = vld [vmem:[#allocation5 + $0x30] sm:$0xff]  ;;  %v47_v11 = vld [vmem:[#allocation5 + $0x28] sm:$0xff]  ;;  %s258_s28 = scalar_lea.vmem %s148_s27, 128  ;;  %p263_p11 = scmp.lt.s32.totalorder %s148_s27, %s148_s27 }
  0x1e   :  { %179 = vmatpush3.msra.mxu0 %v56_v2  ;;  %v46_v12 = vld [vmem:[#allocation5 + $0x20] sm:$0xff]  ;;  %v45_v13 = vld [vmem:[#allocation5 + $0x18] sm:$0xff]  ;;  %v44_v14 = vld [vmem:[#allocation5 + $0x10] sm:$0xff]  ;;  %p259_p10 = scmp.ne.s32.totalorder %s148_s27, %s258_s28  ;;  %p264_p12 = scmp.lt.s32.totalorder %s258_s28, %s258_s28 }
  0x1f   :  { %180 = vmatprep.subr.mxu0 %v288_v0  ;;  %v43_v15 = vld [vmem:[#allocation5 + $0x8] sm:$0xff]  ;;  %v42_v16 = vld [vmem:[#allocation5] sm:$0xff]  ;;  %v41_v17 = vld [vmem:[#allocation2] sm:$0xff] }
  0x20   :  { %181 = vmatpush3.msra.mxu0 %v55_v3  ;;  %v157_v18 = vld [vmem:[%s328_s2] ss:$0 sm:$0xff]  ;;  %v158_v20 = vld [vmem:[%s328_s2 + $0x1] ss:$0 sm:$0xff]  ;;  %p265_p13 = por %p264_p12, %p263_p11 }
  0x21   :  { %182 = vmatprep.subr.mxu0 %v288_v0 }
  0x22   :  { %183 = vmatpush3.msra.mxu0 %v54_v4  ;;  %p266_p0 = pnand %p265_p13, %p259_p10 }
  0x23   :  { %184 = vmatprep.subr.mxu0 %v288_v0 }
  0x24   :  { %185 = vmatpush3.msra.mxu0 %v53_v5 }
  0x25   :  { %186 = vmatprep.subr.mxu0 %v288_v0 }
  0x26   :  { %187 = vmatpush3.msra.mxu0 %v52_v6 }
  0x27   :  { %188 = vmatprep.subr.mxu0 %v288_v0 }
  0x28   :  { %189 = vmatpush3.msra.mxu0 %v51_v7 }
  0x29   :  { %190 = vmatprep.subr.mxu0 %v288_v0 }
  0x2a   :  { %191 = vmatpush3.msra.mxu0 %v50_v8 }
  0x2b   :  { %192 = vmatprep.subr.mxu0 %v288_v0 }
  0x2c   :  { %193 = vmatpush3.msra.mxu0 %v49_v9 }
  0x2d   :  { %194 = vmatprep.subr.mxu0 %v288_v0 }
  0x2e   :  { %195 = vmatpush3.msra.mxu0 %v48_v10 }
  0x2f   :  { %196 = vmatprep.subr.mxu0 %v288_v0 }
  0x30   :  { %197 = vmatpush3.msra.mxu0 %v47_v11 }
  0x31   :  { %198 = vmatprep.subr.mxu0 %v288_v0 }
  0x32   :  { %199 = vmatpush3.msra.mxu0 %v46_v12 }
  0x33   :  { %200 = vmatprep.subr.mxu0 %v288_v0 }
  0x34   :  { %201 = vmatpush3.msra.mxu0 %v45_v13 }
  0x35   :  { %202 = vmatprep.subr.mxu0 %v288_v0 }
  0x36   :  { %203 = vmatpush3.msra.mxu0 %v44_v14 }
  0x37   :  { %204 = vmatprep.subr.mxu0 %v288_v0 }
  0x38   :  { %205 = vmatpush3.msra.mxu0 %v43_v15 }
  0x39   :  { %206 = vmatprep.subr.mxu0 %v288_v0 }
  0x3a   :  { %207 = vmatpush3.msra.mxu0 %v42_v16 }
  0x3b   :  { %209 = vmatmul.mubr.f32.vlgmr.msra.gmra.mxu0 %v41_v17 }
  0xfb   :  { %v124_v19 = vpop.f32.mrf.mxu0 }
  0xfc   :  { %v133_v21 = vmul.f32 %v157_v18, %v124_v19 }
  0xfd   :  { %v210_v22 = vpop.f32.mrf.mxu0 }
  0xfe   :  { %v139_v23 = vadd.f32 %v158_v20, %v133_v21 }
 0x100   :  { %140 = vst [vmem:[#allocation7] sm:$0xff] %v139_v23 }
 0x101   :  { %269 = shalt.err (!%p266_p0)
}
 0x102   :  { %150 = dma.vmem_to_hbm [thread:$0]  %s148_s27, 128, %s329_s3, [#allocation4]  }
 0x103   :  { %282 = dma.done.wait [#allocation4], 128  }
 0x104   :  { %283 = vsyncadd [#allocation4], 4294967168 }
 0x105   :  { %154 = vsyncpa [#allocation3], 1 }
 0x106   :  { %155 = vsyncpa [#allocation6], 1 }
 0x107   :  { %156 = vsyncpa [#allocation4], 1 }

</bundles_post_ra>
